<compile_context>
chip_gen: v6e
topology: v6e:2x2x1
jax: 0.10.0
libtpu: 0.0.40
codegen_flags: <defaults>
</compile_context>

<pallas_src>
import math

import jax
import jax.numpy as jnp
import numpy as np
from jax.experimental import pallas as pl
from jax.experimental.pallas import tpu as pltpu

_LANE = 128

# Flat path: 8192 x 128 = 4 MiB per buffer at the f32 compute width.  The
# in-kernel f32 upconvert is the binding VMEM term, so rows are sized by
# 4 B/elem regardless of HBM dtype (bf16/int8 inputs simply stream smaller HBM
# blocks per step).  Worst case: 3 streams x 2 buffers x 4 MiB + f32 temps
# ~= 28 MiB, under the 40 MiB scoped limit requested below (v5e/v6e have
# 128 MiB physical VMEM, v7x has 64 MiB, so 40 MiB is safe everywhere).
_FLAT_BLOCK_ROWS = 8192
_MIN_ROWS_FOR_CORE_SPLIT = 2048   # split into >=2 blocks so v7x megacore can shard

# General (broadcast) path: ~2 MiB (at 4 B/elem) per buffer per grid step.
_GEN_BLOCK_ROWS = 512
_GEN_BLOCK_COLS = 1024
_GEN_BLOCK_BUDGET_ELEMS = (2 << 20) // 4

_VMEM_LIMIT_BYTES = 40 << 20      # > v5e 16 MiB / v6e,v7x 32 MiB defaults, < v7x 64 MiB physical

_NATIVE_INT_DTYPES = frozenset(
    np.dtype(t) for t in ("int8", "int16", "int32", "uint8", "uint16", "uint32")
)


# --------------------------------------------------------------------------- #
# Kernels (compute in f32, downcast on store; matches torch's float division) #
# --------------------------------------------------------------------------- #
def _div_kernel(a_ref, b_ref, o_ref):
    # Elementwise true division; operand tiles may be broadcast shapes
    # ((1,...,1,bc), etc.) -- jnp broadcasting expands them in-kernel.
    a = a_ref[...].astype(jnp.float32)
    b = b_ref[...].astype(jnp.float32)
    o_ref[...] = (a / b).astype(o_ref.dtype)


def _mul_by_scalar_kernel(a_ref, inv_ref, o_ref):
    # Divisor is a scalar: 1/s was hoisted on the host; inv_ref is a (1,1) f32
    # array in SMEM (true scalar read, no (8,128) tile).  Result can differ from
    # a true divide by ~1 ulp, which matches torch tolerances for this op.
    a = a_ref[...].astype(jnp.float32)
    o_ref[...] = (a * inv_ref[0, 0]).astype(o_ref.dtype)


def _scalar_div_kernel(s_ref, b_ref, o_ref):
    # Dividend is a scalar (SMEM); divide the streamed divisor elementwise.
    b = b_ref[...].astype(jnp.float32)
    o_ref[...] = (s_ref[0, 0] / b).astype(o_ref.dtype)


# --------------------------------------------------------------------------- #
# Flat path: both operands full-size or scalar, element count lane-aligned.   #
# --------------------------------------------------------------------------- #
def _flat_block_rows(M):
    if M > _FLAT_BLOCK_ROWS:
        return _FLAT_BLOCK_ROWS
    if M >= _MIN_ROWS_FOR_CORE_SPLIT:
        # Fits in one block, but split in two so the 'parallel' grid axis has
        # length >= 2 and v7x's second TensorCore can take half the rows.
        half = -(-M // 2)
        return -(-half // 8) * 8          # round up to a multiple of 8 sublanes
    return M                              # full dim (allowed even if not %8)


def _div_flat(x, y, out_shape, out_dtype):
    n = math.prod(out_shape)
    M = n // _LANE
    block_rows = _flat_block_rows(M)
    grid = (pl.cdiv(M, block_rows),)

    stream_spec = pl.BlockSpec((block_rows, _LANE), lambda i: (i, 0))
    smem_spec = pl.BlockSpec(memory_space=pltpu.MemorySpace.SMEM)
    cparams = pltpu.CompilerParams(
        dimension_semantics=("parallel",),
        vmem_limit_bytes=_VMEM_LIMIT_BYTES,
    )
    out_sds = jax.ShapeDtypeStruct((M, _LANE), out_dtype)

    x_scalar = x.size == 1
    y_scalar = y.size == 1

    if y_scalar and not x_scalar:
        # Hoist 1/s (one scalar XLA op); multiply inside the kernel.
        inv = (1.0 / y.astype(jnp.float32)).reshape(1, 1)
        out2 = pl.pallas_call(
            _mul_by_scalar_kernel,
            out_shape=out_sds,
            grid=grid,
            in_specs=[stream_spec, smem_spec],
            out_specs=stream_spec,
            compiler_params=cparams,
        )(x.reshape(M, _LANE), inv)
    elif x_scalar and not y_scalar:
        s = x.astype(jnp.float32).reshape(1, 1)
        out2 = pl.pallas_call(
            _scalar_div_kernel,
            out_shape=out_sds,
            grid=grid,
            in_specs=[smem_spec, stream_spec],
            out_specs=stream_spec,
            compiler_params=cparams,
        )(s, y.reshape(M, _LANE))
    else:
        out2 = pl.pallas_call(
            _div_kernel,
            out_shape=out_sds,
            grid=grid,
            in_specs=[stream_spec, stream_spec],
            out_specs=stream_spec,
            compiler_params=cparams,
        )(x.reshape(M, _LANE), y.reshape(M, _LANE))
    return out2.reshape(out_shape)


# --------------------------------------------------------------------------- #
# General path: arbitrary broadcast patterns, in-kernel broadcast.            #
# --------------------------------------------------------------------------- #
def _merge_broadcast_dims(out_shape, x, y):
    """Merge adjacent output dims whose broadcast status matches on BOTH
    operands (and drop size-1 output dims).  E.g. (N,C,H,W)/(C,1,1) ->
    (N,C,H*W)/(1,C,1), giving lane-dense slabs instead of tiny (H,W) tiles."""
    rank = len(out_shape)
    out_n = tuple(out_shape)
    xs = (1,) * (rank - x.ndim) + x.shape
    ys = (1,) * (rank - y.ndim) + y.shape

    out_m, x_m, y_m = [], [], []
    for d in range(rank):
        if out_n[d] == 1:
            continue  # carries no information; operand dims are 1 here too
        xb, yb = xs[d] == 1, ys[d] == 1
        if out_m and (x_m[-1] == 1) == xb and (y_m[-1] == 1) == yb:
            out_m[-1] *= out_n[d]
            x_m[-1] *= xs[d]
            y_m[-1] *= ys[d]
        else:
            out_m.append(out_n[d])
            x_m.append(xs[d])
            y_m.append(ys[d])

    if not out_m:  # fully scalar output
        out_m, x_m, y_m = [1], [1], [1]
    while len(out_m) < 2:  # TPU wants rank >= 2 for (sublane, lane) tiling
        out_m.insert(0, 1)
        x_m.insert(0, 1)
        y_m.insert(0, 1)
    return tuple(out_m), x.reshape(tuple(x_m)), y.reshape(tuple(y_m))


def _div_general(x, y, out_shape, out_dtype):
    out_n, xn, yn = _merge_broadcast_dims(out_shape, x, y)
    rank = len(out_n)

    R, C = out_n[-2], out_n[-1]
    bc = C if C <= _GEN_BLOCK_COLS else _GEN_BLOCK_COLS   # full or %128
    br = R if R <= _GEN_BLOCK_ROWS else _GEN_BLOCK_ROWS   # full or %8
    block = [1] * (rank - 2) + [br, bc]

    # Extend leading dims (innermost first, full dims only -> no partial leading
    # blocks) so each grid step moves ~_GEN_BLOCK_BUDGET_ELEMS elements.
    elems = br * bc
    for d in range(rank - 3, -1, -1):
        if elems * out_n[d] <= _GEN_BLOCK_BUDGET_ELEMS:
            block[d] = out_n[d]
            elems *= out_n[d]
        else:
            break
    block = tuple(block)
    grid = tuple(pl.cdiv(out_n[d], block[d]) for d in range(rank))

    def in_spec(shape):
        blk = tuple(block[d] if shape[d] != 1 else 1 for d in range(rank))

        def index_map(*g, _s=shape):
            return tuple(g[d] if _s[d] != 1 else 0 for d in range(rank))

        return pl.BlockSpec(blk, index_map)

    out_arr = pl.pallas_call(
        _div_kernel,
        out_shape=jax.ShapeDtypeStruct(out_n, out_dtype),
        grid=grid,
        in_specs=[in_spec(xn.shape), in_spec(yn.shape)],
        out_specs=pl.BlockSpec(block, lambda *g: g),
        compiler_params=pltpu.CompilerParams(
            dimension_semantics=("parallel",) * rank,
            vmem_limit_bytes=_VMEM_LIMIT_BYTES,
        ),
    )(xn, yn)
    return out_arr.reshape(out_shape)


# --------------------------------------------------------------------------- #
# torch.div semantics wrapper                                                 #
# --------------------------------------------------------------------------- #
def _keep_native_over_hbm(dt):
    if jnp.issubdtype(dt, jnp.floating) and np.dtype(dt).itemsize <= 4:
        return True                     # f32 / bf16 / f16 stream natively
    if np.dtype(dt) in _NATIVE_INT_DTYPES:
        return True                     # ints stream natively; kernel casts to f32
    return False                        # bool / exotic dtypes: rare, pre-cast


def pallas_div(input, other):
    """torch.div(input, other): broadcast, promote ints/bools to float, true-divide."""
    x = jnp.asarray(input)
    y = jnp.asarray(other)
    out_shape = jnp.broadcast_shapes(x.shape, y.shape)
    out_dtype = jnp.result_type(input, other)
    if jnp.issubdtype(out_dtype, jnp.integer) or jnp.issubdtype(out_dtype, jnp.bool_):
        out_dtype = jnp.float32   # torch.div always true-divides int/bool inputs
    elif np.dtype(out_dtype).itemsize > 4:
        out_dtype = jnp.float32   # TODO(synk): f64 unsupported on TPU kernel; compute in f32

    if not _keep_native_over_hbm(x.dtype):
        x = x.astype(jnp.float32)
    if not _keep_native_over_hbm(y.dtype):
        y = y.astype(jnp.float32)

    n = math.prod(out_shape)
    if n == 0:
        return jnp.zeros(out_shape, out_dtype)

    flat_ok = (n % _LANE == 0) and (x.size in (1, n)) and (y.size in (1, n))
    if flat_ok:
        return _div_flat(x, y, out_shape, out_dtype)
    return _div_general(x, y, out_shape, out_dtype)


class Div:
    """JAX/Pallas equivalent of horizon_plugin_pytorch.nn.div.Div."""

    def __init__(self, reciprocal_max_value=None):
        # TODO(synk): reciprocal_max_value only affects the quantized/int-infer
        # reciprocal path, which has no float-forward equivalent here.
        self.reciprocal_max_value = reciprocal_max_value

    def __call__(self, input, other, rounding_mode=None):
        if rounding_mode is not None:
            raise ValueError("Unsupported rounding_mode {}".format(rounding_mode))
        return pallas_div(input, other)


if __name__ == "__main__":
    key = jax.random.PRNGKey(0)
    k1, k2, k3, k4 = jax.random.split(key, 4)
    div = Div()

    x = jax.random.normal(k1, (2, 4, 16, 16), dtype=jnp.float32)

    # 1) Broadcasting divisor (C, 1, W) against NCHW -> general path (no merge possible,
    #    leading dims are blocked into a single grid step).
    other = jax.random.uniform(k2, (4, 1, 16), dtype=jnp.float32, minval=0.5, maxval=1.5)
    out = jax.block_until_ready(div(x, other))
    ref = x / other
    assert out.shape == ref.shape, (out.shape, ref.shape)
    assert out.dtype == ref.dtype, (out.dtype, ref.dtype)
    assert jnp.allclose(out, ref, rtol=1e-6, atol=1e-6)

    # 2) Per-channel divisor (C, 1, 1) -> general path, dims merge to lane-dense (2, 4, 256).
    ch = jax.random.uniform(k3, (4, 1, 1), dtype=jnp.float32, minval=0.5, maxval=1.5)
    out_c = jax.block_until_ready(div(x, ch))
    assert jnp.allclose(out_c, x / ch, rtol=1e-6, atol=1e-6)

    # 3) Python-float scalar divisor -> flat path, scalar in SMEM, reciprocal-multiply.
    out_s = jax.block_until_ready(div(x, 2.5))
    assert jnp.allclose(out_s, x / 2.5, rtol=1e-6, atol=1e-6)

    # 4) Same-shape divisor -> flat streaming path, both operands streamed.
    y_full = jax.random.uniform(k4, (2, 4, 16, 16), dtype=jnp.float32, minval=0.5, maxval=1.5)
    out_f = jax.block_until_ready(div(x, y_full))
    assert jnp.allclose(out_f, x / y_full, rtol=1e-6, atol=1e-6)

    # 5) bf16 inputs stay bf16 over HBM end-to-end (f32 compute inside the kernel).
    xb = x.astype(jnp.bfloat16)
    yb = y_full.astype(jnp.bfloat16)
    out_b = jax.block_until_ready(div(xb, yb))
    refb = (xb.astype(jnp.float32) / yb.astype(jnp.float32)).astype(jnp.bfloat16)
    assert out_b.dtype == jnp.bfloat16, out_b.dtype
    assert jnp.allclose(out_b.astype(jnp.float32), refb.astype(jnp.float32), rtol=2e-2, atol=2e-2)

    # 6) int32 tensor / python int -> ints stay native over HBM, true division yields f32.
    xi = jax.random.randint(k1, (2, 4, 16, 16), -50, 50, dtype=jnp.int32)
    out_i = jax.block_until_ready(div(xi, 4))
    assert out_i.dtype == jnp.float32, out_i.dtype
    assert jnp.allclose(out_i, xi.astype(jnp.float32) / 4.0, rtol=1e-6, atol=1e-6)

    print("KERNEL_OK")
</pallas_src>

<mosaic_0001>
module attributes {stable_mosaic.version = 11 : i64} {
  func.func @_div_kernel(%arg0: i32, %arg1: i32, %arg2: i32, %arg3: i32, %arg4: memref<2x4x16x16xf32, #tpu.memory_space<vmem>>, %arg5: memref<1x4x1x16xf32, #tpu.memory_space<vmem>>, %arg6: memref<2x4x16x16xf32, #tpu.memory_space<vmem>>) attributes {dimension_semantics = [#tpu.dimension_semantics<parallel>, #tpu.dimension_semantics<parallel>, #tpu.dimension_semantics<parallel>, #tpu.dimension_semantics<parallel>], iteration_bounds = array<i64: 1, 1, 1, 1>, scalar_prefetch = 0 : i64, scratch_operands = 0 : i64, tpu.core_type = #tpu.core_type<tc>, window_params = [{transform_indices = @transform_0, window_bounds = array<i64: 2, 4, 16, 16>}, {transform_indices = @transform_1, window_bounds = array<i64: 1, 4, 1, 16>}, {transform_indices = @transform_2, window_bounds = array<i64: 2, 4, 16, 16>}]} {
    %c0 = arith.constant 0 : index
    %c0_0 = arith.constant 0 : index
    %c0_1 = arith.constant 0 : index
    %c0_2 = arith.constant 0 : index
    %0 = vector.load %arg4[%c0, %c0_0, %c0_1, %c0_2] : memref<2x4x16x16xf32, #tpu.memory_space<vmem>>, vector<2x4x16x16xf32>
    %c0_3 = arith.constant 0 : index
    %c0_4 = arith.constant 0 : index
    %c0_5 = arith.constant 0 : index
    %c0_6 = arith.constant 0 : index
    %1 = vector.load %arg5[%c0_3, %c0_4, %c0_5, %c0_6] : memref<1x4x1x16xf32, #tpu.memory_space<vmem>>, vector<1x4x1x16xf32>
    %2 = vector.broadcast %1 : vector<1x4x1x16xf32> to vector<2x4x16x16xf32>
    %3 = arith.divf %0, %2 : vector<2x4x16x16xf32>
    %c0_7 = arith.constant 0 : index
    %c0_8 = arith.constant 0 : index
    %c0_9 = arith.constant 0 : index
    %c0_10 = arith.constant 0 : index
    %4 = vector.load %arg6[%c0_7, %c0_8, %c0_9, %c0_10] : memref<2x4x16x16xf32, #tpu.memory_space<vmem>>, vector<2x4x16x16xf32>
    tpu.vector_store %arg6[%c0_7, %c0_8, %c0_9, %c0_10], %3 {strides = array<i32>} : memref<2x4x16x16xf32, #tpu.memory_space<vmem>>, vector<2x4x16x16xf32>,
    return
  }
  func.func @transform_0(%arg0: i32, %arg1: i32, %arg2: i32, %arg3: i32) -> (i32, i32, i32, i32) {
    %c0_i32 = arith.constant 0 : i32
    return %arg0, %arg1, %arg2, %arg3 : i32, i32, i32, i32
  }
  func.func @transform_1(%arg0: i32, %arg1: i32, %arg2: i32, %arg3: i32) -> (i32, i32, i32, i32) {
    %c0_i32 = arith.constant 0 : i32
    %c0_i32_0 = arith.constant 0 : i32
    %c0_i32_1 = arith.constant 0 : i32
    return %c0_i32, %arg1, %c0_i32_0, %arg3 : i32, i32, i32, i32
  }
  func.func @transform_2(%arg0: i32, %arg1: i32, %arg2: i32, %arg3: i32) -> (i32, i32, i32, i32) {
    %c0_i32 = arith.constant 0 : i32
    return %arg0, %arg1, %arg2, %arg3 : i32, i32, i32, i32
  }
}

</mosaic_0001>

<bundles_post_ra>
// kernel: tpu_custom_call.1
= control target key start
LH: loop header
LB: loop body
LE: loop exit
PB: predicated region body
PF: predicated region fallthrough
CT: control target
= control target key end

     0   :  { %7 = vsyncpa [#allocation3], 0  ;;  %s277_s0 = inlined_call_operand.hbm [shape: f32[2,4,16,16], index: 0, kind: input, shape index: {}]   ;;  %s278_s1 = inlined_call_operand.hbm [shape: f32[1,4,1,16], index: 1, kind: input, shape index: {}]   ;;  %s279_s2 = inlined_call_operand.hbm [shape: f32[2,4,16,16], index: 2, kind: output, shape index: {}]  }
   0x1   :  { %8 = vsyncpa [#allocation6], 0 }
   0x2   :  { %9 = vsyncpa [#allocation4], 0  ;;  %s224_s9 = smov [#allocation2]  }
   0x3   :  { %s15_s10 = sshll.u32 %s224_s9, 4  ;;  %s16_s10 = int_to_ptr.vmem [resolvable:$true] %s15_s10 }
   0x4   :  { %s166_s11 = scalar_lea.vmem %s16_s10, 2048  ;;  %p171_p1 = scmp.lt.s32.totalorder %s16_s10, %s16_s10 }
   0x5   :  { %p167_p0 = scmp.ne.s32.totalorder %s16_s10, %s166_s11  ;;  %p172_p2 = scmp.lt.s32.totalorder %s166_s11, %s166_s11 }
   0x7   :  { %p173_p3 = por %p172_p2, %p171_p1 }
   0x9   :  { %p174_p4 = pnand %p173_p3, %p167_p0 }
   0xb   :  { %177 = shalt.err (!%p174_p4)
}
   0xc   :  { %s225_s12 = smov 128   ;;  %s226_s13 = smov 8  }
   0xd   :  { %21 = dma.hbm_to_vmem [thread:$0]  %s277_s0, 2048, %s16_s10, [#allocation3], %s225_s12, %s225_s12, %s226_s13  }
   0xe   :  { %s227_s16 = smov [#allocation5]  }
   0xf   :  { %s27_s17 = sshll.u32 %s227_s16, 4  ;;  %s28_s17 = int_to_ptr.vmem [resolvable:$true] %s27_s17 }
  0x10   :  { %s186_s18 = scalar_lea.vmem %s28_s17, 64  ;;  %p191_p6 = scmp.lt.s32.totalorder %s28_s17, %s28_s17 }
  0x11   :  { %p187_p5 = scmp.ne.s32.totalorder %s28_s17, %s186_s18  ;;  %p192_p7 = scmp.lt.s32.totalorder %s186_s18, %s186_s18 }
  0x13   :  { %p193_p8 = por %p192_p7, %p191_p6 }
  0x15   :  { %p194_p9 = pnand %p193_p8, %p187_p5 }
  0x17   :  { %197 = shalt.err (!%p194_p9)
}
  0x18   :  { %s228_s19 = smov 16   ;;  %s229_s20 = smov 1  }
  0x19   :  { %33 = dma.hbm_to_vmem [thread:$0]  %s278_s1, 64, %s28_s17, [#allocation6], %s228_s19, %s228_s19, %s229_s20  }
  0x1a   :  { %218 = dma.done.wait [#allocation3], 2048  }
  0x1b   :  { %219 = vsyncadd [#allocation3], 4294965248 }
  0x1c   :  { %220 = dma.done.wait [#allocation6], 64  }
  0x1d   :  { %221 = vsyncadd [#allocation6], 4294967232  ;;  %v139_v0 = vld [vmem:[#allocation5] ss:$0 sm:$0xff]  ;;  %v140_v1 = vld [vmem:[#allocation5 + $0x1] ss:$0 sm:$0xff] }
  0x1e   :  { %150 = vrcp.f32 %v139_v0  ;;  %v141_v2 = vld [vmem:[#allocation5 + $0x2] ss:$0 sm:$0xff]  ;;  %v142_v3 = vld [vmem:[#allocation5 + $0x3] ss:$0 sm:$0xff]  ;;  %v41_v5 = vld [vmem:[#allocation2 + $0x8] sm:$0xff]  ;;  %vm104_vm0 = vcmask 130048  }
  0x1f   :  { %152 = vrcp.f32 %v140_v1  ;;  %v40_v4 = vld [vmem:[#allocation2] sm:$0xff]  ;;  %v42_v6 = vld [vmem:[#allocation2 + $0x10] sm:$0xff]  ;;  %v43_v7 = vld [vmem:[#allocation2 + $0x18] sm:$0xff]  ;;  %s230_s0 = smov [#allocation7]  }
  0x20   :  { %154 = vrcp.f32 %v141_v2  ;;  %v44_v8 = vld [vmem:[#allocation2 + $0x20] sm:$0xff]  ;;  %v49_v10 = vld [vmem:[#allocation2 + $0x48] sm:$0xff]  ;;  %v50_v12 = vld [vmem:[#allocation2 + $0x50] sm:$0xff]  ;;  %s126_s1 = sshll.u32 %s230_s0, 4  ;;  %s127_s1 = int_to_ptr.vmem [resolvable:$true] %s126_s1 }
  0x21   :  { %156 = vrcp.f32 %v142_v3  ;;  %v48_v9 = vld [vmem:[#allocation2 + $0x40] sm:$0xff]  ;;  %v45_v11 = vld [vmem:[#allocation2 + $0x28] sm:$0xff]  ;;  %v51_v13 = vld [vmem:[#allocation2 + $0x58] sm:$0xff]  ;;  %s198_s23 = scalar_lea.vmem %s127_s1, 2048  ;;  %p203_p11 = scmp.lt.s32.totalorder %s127_s1, %s127_s1 }
  0x22   :  { %v46_v15 = vld [vmem:[#allocation2 + $0x30] sm:$0xff]  ;;  %v52_v16 = vld [vmem:[#allocation2 + $0x60] sm:$0xff]  ;;  %v53_v17 = vld [vmem:[#allocation2 + $0x68] sm:$0xff]  ;;  %p199_p10 = scmp.ne.s32.totalorder %s127_s1, %s198_s23  ;;  %p204_p12 = scmp.lt.s32.totalorder %s198_s23, %s198_s23 }
  0x23   :  { %v47_v21 = vld [vmem:[#allocation2 + $0x38] sm:$0xff]  ;;  %v54_v24 = vld [vmem:[#allocation2 + $0x70] sm:$0xff] }
  0x24   :  { %v55_v25 = vld [vmem:[#allocation2 + $0x78] sm:$0xff]  ;;  %p205_p13 = por %p204_p12, %p203_p11 }
  0x26   :  { %p206_p0 = pnand %p205_p13, %p199_p10 }
  0x2b   :  { %v151_v14 = vpop.eup %150 }
  0x2c   :  { %v153_v18 = vpop.eup %152  ;;  %v85_v19 = vmul.f32 %v151_v14, %v40_v4  ;;  %v86_v20 = vmul.f32 %v151_v14, %v41_v5  ;;  %v96_v22 = vmul.f32 %v151_v14, %v48_v9  ;;  %v97_v23 = vmul.f32 %v151_v14, %v49_v10 }
  0x2d   :  { %v155_v26 = vpop.eup %154  ;;  %v88_v27 = vmul.f32 %v153_v18, %v42_v6  ;;  %v89_v28 = vmul.f32 %v153_v18, %v43_v7  ;;  %v98_v29 = vmul.f32 %v153_v18, %v50_v12  ;;  %v99_v30 = vmul.f32 %v153_v18, %v51_v13 }
  0x2e   :  { %v157_v31 = vpop.eup %156  ;;  %105 = vst.msk [vmem:[#allocation7] sm:$0xff] %vm104_vm0, %v85_v19  ;;  %106 = vst.msk [vmem:[#allocation7 + $0x8] sm:$0xff] %vm104_vm0, %v86_v20  ;;  %v91_v32 = vmul.f32 %v155_v26, %v44_v8  ;;  %v92_v33 = vmul.f32 %v155_v26, %v45_v11  ;;  %v100_v34 = vmul.f32 %v155_v26, %v52_v16 }
  0x2f   :  { %113 = vst.msk [vmem:[#allocation7 + $0x40] sm:$0xff] %vm104_vm0, %v96_v22  ;;  %114 = vst.msk [vmem:[#allocation7 + $0x48] sm:$0xff] %vm104_vm0, %v97_v23  ;;  %v101_v35 = vmul.f32 %v155_v26, %v53_v17  ;;  %v94_v36 = vmul.f32 %v157_v31, %v46_v15  ;;  %v95_v37 = vmul.f32 %v157_v31, %v47_v21 }
  0x30   :  { %107 = vst.msk [vmem:[#allocation7 + $0x10] sm:$0xff] %vm104_vm0, %v88_v27  ;;  %108 = vst.msk [vmem:[#allocation7 + $0x18] sm:$0xff] %vm104_vm0, %v89_v28  ;;  %v102_v38 = vmul.f32 %v157_v31, %v54_v24  ;;  %v103_v39 = vmul.f32 %v157_v31, %v55_v25 }
  0x31   :  { %115 = vst.msk [vmem:[#allocation7 + $0x50] sm:$0xff] %vm104_vm0, %v98_v29  ;;  %116 = vst.msk [vmem:[#allocation7 + $0x58] sm:$0xff] %vm104_vm0, %v99_v30 }
  0x32   :  { %109 = vst.msk [vmem:[#allocation7 + $0x20] sm:$0xff] %vm104_vm0, %v91_v32  ;;  %110 = vst.msk [vmem:[#allocation7 + $0x28] sm:$0xff] %vm104_vm0, %v92_v33 }
  0x33   :  { %117 = vst.msk [vmem:[#allocation7 + $0x60] sm:$0xff] %vm104_vm0, %v100_v34  ;;  %118 = vst.msk [vmem:[#allocation7 + $0x68] sm:$0xff] %vm104_vm0, %v101_v35 }
  0x34   :  { %111 = vst.msk [vmem:[#allocation7 + $0x30] sm:$0xff] %vm104_vm0, %v94_v36  ;;  %112 = vst.msk [vmem:[#allocation7 + $0x38] sm:$0xff] %vm104_vm0, %v95_v37 }
  0x35   :  { %119 = vst.msk [vmem:[#allocation7 + $0x70] sm:$0xff] %vm104_vm0, %v102_v38  ;;  %120 = vst.msk [vmem:[#allocation7 + $0x78] sm:$0xff] %vm104_vm0, %v103_v39 }
  0x36   :  { %209 = shalt.err (!%p206_p0)
}
  0x37   :  { %132 = dma.vmem_to_hbm [thread:$0]  %s127_s1, 2048, %s279_s2, [#allocation4], %s225_s12, %s225_s12, %s226_s13  }
  0x38   :  { %222 = dma.done.wait [#allocation4], 2048  }
  0x39   :  { %223 = vsyncadd [#allocation4], 4294965248 }
  0x3a   :  { %136 = vsyncpa [#allocation3], 1 }
  0x3b   :  { %137 = vsyncpa [#allocation6], 1 }
  0x3c   :  { %138 = vsyncpa [#allocation4], 1 }

</bundles_post_ra>
